<compile_context>
chip_gen: v7x
topology: tpu7x:2x2x1
jax: 0.10.0
libtpu: 0.0.40
codegen_flags: <defaults>
</compile_context>

<pallas_src>
import functools

import jax
import jax.numpy as jnp
import numpy as np
from jax.experimental import pallas as pl
from jax.experimental.pallas import tpu as pltpu

LANE = 128
SUBLANE = 8


def _round_up(x, m):
    return ((x + m - 1) // m) * m


# ----------------------------- fused Pallas kernel --------------------------
def _fused_ae_kernel(*refs, n_enc: int, n_dec: int):
    """Chained Linear(+ReLU) layers for encoder then decoder.

    refs = [x, w0, b0, w1, b1, ..., z_out, xrecon_out]
    ReLU after every hidden layer; no activation after the last encoder layer
    (which produces z) nor after the last decoder layer (which produces
    x_recon), matching the PyTorch module.
    """
    n_layers = n_enc + n_dec
    x_ref = refs[0]
    param_refs = refs[1:1 + 2 * n_layers]
    z_ref, xr_ref = refs[1 + 2 * n_layers:]

    h = x_ref[...]  # (tile_b, F) f32, stays in vregs across all layers
    for i in range(n_layers):
        w = param_refs[2 * i][...]        # (F, F)
        b = param_refs[2 * i + 1][...]    # (1, F) -> broadcasts over rows
        h = jnp.dot(h, w, preferred_element_type=jnp.float32) + b
        last_enc = i == n_enc - 1
        last_dec = i == n_layers - 1
        if not (last_enc or last_dec):
            h = jnp.maximum(h, 0.0)
        if last_enc:
            z_ref[...] = h.astype(z_ref.dtype)
        if last_dec:
            xr_ref[...] = h.astype(xr_ref.dtype)


def _fused_autoencoder_call(x_pad, padded_flat, n_enc, n_dec, tile_b):
    """One pallas_call running the whole (padded) autoencoder."""
    B_pad, F = x_pad.shape
    n_layers = n_enc + n_dec
    grid = (B_pad // tile_b,)

    in_specs = [pl.BlockSpec((tile_b, F), lambda i: (i, 0))]
    for _ in range(n_layers):
        in_specs.append(pl.BlockSpec((F, F), lambda i: (0, 0)))   # weight, VMEM-resident
        in_specs.append(pl.BlockSpec((1, F), lambda i: (0, 0)))   # bias
    out_specs = (
        pl.BlockSpec((tile_b, F), lambda i: (i, 0)),
        pl.BlockSpec((tile_b, F), lambda i: (i, 0)),
    )
    out_shape = (
        jax.ShapeDtypeStruct((B_pad, F), x_pad.dtype),
        jax.ShapeDtypeStruct((B_pad, F), x_pad.dtype),
    )

    flops = 2 * B_pad * n_layers * F * F
    bytes_params = sum(int(np.prod(p.shape)) * 4 for p in padded_flat)
    bytes_accessed = bytes_params + 3 * B_pad * F * 4  # x in + z,xr out

    return pl.pallas_call(
        functools.partial(_fused_ae_kernel, n_enc=n_enc, n_dec=n_dec),
        out_shape=out_shape,
        grid=grid,
        in_specs=in_specs,
        out_specs=out_specs,
        compiler_params=pltpu.CompilerParams(
            dimension_semantics=("parallel",),  # batch tiles shard across TCs on v7x
        ),
        cost_estimate=pl.CostEstimate(
            flops=flops, transcendentals=0, bytes_accessed=bytes_accessed
        ),
    )(x_pad, *padded_flat)


# -------------------------- Parameter construction --------------------------
def _init_linear(key, fan_in, fan_out, dtype=jnp.float32):
    """Deterministic init mimicking nn.Linear's uniform(-1/sqrt(fan_in), ...)."""
    kw, kb = jax.random.split(key)
    bound = 1.0 / np.sqrt(fan_in)
    # stored as (in, out) == PyTorch weight.T
    w = jax.random.uniform(kw, (fan_in, fan_out), dtype, -bound, bound)
    b = jax.random.uniform(kb, (fan_out,), dtype, -bound, bound)
    return w, b


def build_network_params(key, input_dim, output_dim, widths):
    """Replicates build_network_layers.__init__ parameter shapes."""
    params = []
    if len(widths) != 0:
        dims_in = ([input_dim] + widths)[:-1]
        for d_in, d_out in zip(dims_in, widths):
            key, sub = jax.random.split(key)
            params.append(_init_linear(sub, d_in, d_out))
        key, sub = jax.random.split(key)
        params.append(_init_linear(sub, widths[-1], output_dim))
    else:
        key, sub = jax.random.split(key)
        params.append(_init_linear(sub, input_dim, output_dim))
    return params


def pad_params(params, feat):
    """Zero-pad each (w, b) to lane-dense (feat, feat) / (1, feat) once at build time."""
    padded = []
    for w, b in params:
        d_in, d_out = w.shape
        w_p = jnp.zeros((feat, feat), w.dtype).at[:d_in, :d_out].set(w)
        b_p = jnp.zeros((1, feat), b.dtype).at[0, :d_out].set(b)
        padded.extend([w_p, b_p])
    return padded


# ------------------------------- Forward pass --------------------------------
@functools.partial(
    jax.jit, static_argnames=("n_enc", "n_dec", "latent_dim", "recon_dim")
)
def _fused_forward(x, padded_flat, n_enc, n_dec, latent_dim, recon_dim):
    B, Din = x.shape
    feat = padded_flat[0].shape[0]
    tile_b = LANE if B >= LANE else _round_up(B, SUBLANE)
    B_pad = _round_up(B, tile_b)
    x_pad = jnp.zeros((B_pad, feat), x.dtype).at[:B, :Din].set(x)
    z_pad, xr_pad = _fused_autoencoder_call(x_pad, padded_flat, n_enc, n_dec, tile_b)
    return z_pad[:B, :latent_dim], xr_pad[:B, :recon_dim]


def nonlinear_autoencoder_forward(x, enc_params, dec_params, enc_padded, dec_padded):
    """Mirrors nonlinear_autoencoder.forward.

    Returns (z, x_recon, encoder_weights, encoder_biases,
             decoder_weights, decoder_biases) -- weights reported in PyTorch
    convention (out_features, in_features).
    """
    latent_dim = enc_params[-1][0].shape[1]
    recon_dim = dec_params[-1][0].shape[1]
    z, x_recon = _fused_forward(
        x,
        enc_padded + dec_padded,
        n_enc=len(enc_params),
        n_dec=len(dec_params),
        latent_dim=latent_dim,
        recon_dim=recon_dim,
    )
    enc_w = [w.T for (w, _) in enc_params]
    enc_b = [b for (_, b) in enc_params]
    dec_w = [w.T for (w, _) in dec_params]
    dec_b = [b for (_, b) in dec_params]
    return z, x_recon, enc_w, enc_b, dec_w, dec_b


# ------------------------------- Reference -----------------------------------
def _ref_network(x, params):
    n = len(params)
    for i, (w, b) in enumerate(params):
        x = x @ w + b
        if i != n - 1:
            x = jnp.maximum(x, 0.0)
    return x


if __name__ == "__main__":
    # Small shapes consistent with the module: Linear-only MLP autoencoder.
    batch = 8
    input_dim = 16
    latent_dim = 4
    widths = [32, 16]

    key = jax.random.PRNGKey(0)
    k_x, k_enc, k_dec = jax.random.split(key, 3)

    x = jax.random.normal(k_x, (batch, input_dim), dtype=jnp.float32)

    enc_params = build_network_params(k_enc, input_dim, latent_dim, widths)
    dec_params = build_network_params(k_dec, latent_dim, input_dim, widths)

    # One-time lane-dense padding of all parameters.
    feat = max(LANE, _round_up(max([input_dim, latent_dim] + list(widths)), LANE))
    enc_padded = pad_params(enc_params, feat)
    dec_padded = pad_params(dec_params, feat)

    z, x_recon, enc_w, enc_b, dec_w, dec_b = nonlinear_autoencoder_forward(
        x, enc_params, dec_params, enc_padded, dec_padded
    )
    jax.block_until_ready((z, x_recon))

    # Sanity check against a pure-JAX reference of the same math.
    z_ref = _ref_network(x, enc_params)
    xr_ref = _ref_network(z_ref, dec_params)
    assert z.shape == (batch, latent_dim)
    assert x_recon.shape == (batch, input_dim)
    np.testing.assert_allclose(np.asarray(z), np.asarray(z_ref), rtol=1e-5, atol=1e-5)
    np.testing.assert_allclose(
        np.asarray(x_recon), np.asarray(xr_ref), rtol=1e-5, atol=1e-5
    )

    print("KERNEL_OK")
</pallas_src>

<mosaic_0001>
module attributes {stable_mosaic.version = 11 : i64} {
  func.func @_fused_ae_kernel(%arg0: i32, %arg1: memref<8x128xf32, #tpu.memory_space<vmem>>, %arg2: memref<128x128xf32, #tpu.memory_space<vmem>>, %arg3: memref<1x128xf32, #tpu.memory_space<vmem>>, %arg4: memref<128x128xf32, #tpu.memory_space<vmem>>, %arg5: memref<1x128xf32, #tpu.memory_space<vmem>>, %arg6: memref<128x128xf32, #tpu.memory_space<vmem>>, %arg7: memref<1x128xf32, #tpu.memory_space<vmem>>, %arg8: memref<128x128xf32, #tpu.memory_space<vmem>>, %arg9: memref<1x128xf32, #tpu.memory_space<vmem>>, %arg10: memref<128x128xf32, #tpu.memory_space<vmem>>, %arg11: memref<1x128xf32, #tpu.memory_space<vmem>>, %arg12: memref<128x128xf32, #tpu.memory_space<vmem>>, %arg13: memref<1x128xf32, #tpu.memory_space<vmem>>, %arg14: memref<8x128xf32, #tpu.memory_space<vmem>>, %arg15: memref<8x128xf32, #tpu.memory_space<vmem>>) attributes {dimension_semantics = [#tpu.dimension_semantics<parallel>], iteration_bounds = array<i64: 1>, scalar_prefetch = 0 : i64, scratch_operands = 0 : i64, tpu.core_type = #tpu.core_type<tc>, window_params = [{transform_indices = @transform_0, window_bounds = array<i64: 8, 128>}, {pipeline_mode = #tpu.pipeline_mode<synchronous>, transform_indices = @transform_1, window_bounds = array<i64: 128, 128>}, {pipeline_mode = #tpu.pipeline_mode<synchronous>, transform_indices = @transform_2, window_bounds = array<i64: 1, 128>}, {pipeline_mode = #tpu.pipeline_mode<synchronous>, transform_indices = @transform_3, window_bounds = array<i64: 128, 128>}, {pipeline_mode = #tpu.pipeline_mode<synchronous>, transform_indices = @transform_4, window_bounds = array<i64: 1, 128>}, {pipeline_mode = #tpu.pipeline_mode<synchronous>, transform_indices = @transform_5, window_bounds = array<i64: 128, 128>}, {pipeline_mode = #tpu.pipeline_mode<synchronous>, transform_indices = @transform_6, window_bounds = array<i64: 1, 128>}, {pipeline_mode = #tpu.pipeline_mode<synchronous>, transform_indices = @transform_7, window_bounds = array<i64: 128, 128>}, {pipeline_mode = #tpu.pipeline_mode<synchronous>, transform_indices = @transform_8, window_bounds = array<i64: 1, 128>}, {pipeline_mode = #tpu.pipeline_mode<synchronous>, transform_indices = @transform_9, window_bounds = array<i64: 128, 128>}, {pipeline_mode = #tpu.pipeline_mode<synchronous>, transform_indices = @transform_10, window_bounds = array<i64: 1, 128>}, {pipeline_mode = #tpu.pipeline_mode<synchronous>, transform_indices = @transform_11, window_bounds = array<i64: 128, 128>}, {pipeline_mode = #tpu.pipeline_mode<synchronous>, transform_indices = @transform_12, window_bounds = array<i64: 1, 128>}, {transform_indices = @transform_13, window_bounds = array<i64: 8, 128>}, {transform_indices = @transform_14, window_bounds = array<i64: 8, 128>}]} {
    %c0 = arith.constant 0 : index
    %c0_0 = arith.constant 0 : index
    %0 = vector.load %arg1[%c0, %c0_0] : memref<8x128xf32, #tpu.memory_space<vmem>>, vector<8x128xf32>
    %c0_1 = arith.constant 0 : index
    %c0_2 = arith.constant 0 : index
    %1 = vector.load %arg2[%c0_1, %c0_2] : memref<128x128xf32, #tpu.memory_space<vmem>>, vector<128x128xf32>
    %c0_3 = arith.constant 0 : index
    %c0_4 = arith.constant 0 : index
    %2 = vector.load %arg3[%c0_3, %c0_4] : memref<1x128xf32, #tpu.memory_space<vmem>>, vector<1x128xf32>
    %cst = arith.constant dense<0.000000e+00> : vector<8x128xf32>
    %3 = tpu.matmul %0, %1, %cst {dimension_numbers = #tpu.dot_dimension_numbers<[1], [0], [0], [1], [0, 0, 1, 1], [], []>} : vector<8x128xf32>, vector<128x128xf32>, vector<8x128xf32> -> vector<8x128xf32>
    %4 = vector.broadcast %2 : vector<1x128xf32> to vector<8x128xf32>
    %5 = arith.addf %3, %4 : vector<8x128xf32>
    %cst_5 = arith.constant 0.000000e+00 : f32
    %6 = vector.broadcast %cst_5 : f32 to vector<8x128xf32>
    %7 = arith.maximumf %5, %6 : vector<8x128xf32>
    %c0_6 = arith.constant 0 : index
    %c0_7 = arith.constant 0 : index
    %8 = vector.load %arg4[%c0_6, %c0_7] : memref<128x128xf32, #tpu.memory_space<vmem>>, vector<128x128xf32>
    %c0_8 = arith.constant 0 : index
    %c0_9 = arith.constant 0 : index
    %9 = vector.load %arg5[%c0_8, %c0_9] : memref<1x128xf32, #tpu.memory_space<vmem>>, vector<1x128xf32>
    %cst_10 = arith.constant dense<0.000000e+00> : vector<8x128xf32>
    %10 = tpu.matmul %7, %8, %cst_10 {dimension_numbers = #tpu.dot_dimension_numbers<[1], [0], [0], [1], [0, 0, 1, 1], [], []>} : vector<8x128xf32>, vector<128x128xf32>, vector<8x128xf32> -> vector<8x128xf32>
    %11 = vector.broadcast %9 : vector<1x128xf32> to vector<8x128xf32>
    %12 = arith.addf %10, %11 : vector<8x128xf32>
    %cst_11 = arith.constant 0.000000e+00 : f32
    %13 = vector.broadcast %cst_11 : f32 to vector<8x128xf32>
    %14 = arith.maximumf %12, %13 : vector<8x128xf32>
    %c0_12 = arith.constant 0 : index
    %c0_13 = arith.constant 0 : index
    %15 = vector.load %arg6[%c0_12, %c0_13] : memref<128x128xf32, #tpu.memory_space<vmem>>, vector<128x128xf32>
    %c0_14 = arith.constant 0 : index
    %c0_15 = arith.constant 0 : index
    %16 = vector.load %arg7[%c0_14, %c0_15] : memref<1x128xf32, #tpu.memory_space<vmem>>, vector<1x128xf32>
    %cst_16 = arith.constant dense<0.000000e+00> : vector<8x128xf32>
    %17 = tpu.matmul %14, %15, %cst_16 {dimension_numbers = #tpu.dot_dimension_numbers<[1], [0], [0], [1], [0, 0, 1, 1], [], []>} : vector<8x128xf32>, vector<128x128xf32>, vector<8x128xf32> -> vector<8x128xf32>
    %18 = vector.broadcast %16 : vector<1x128xf32> to vector<8x128xf32>
    %19 = arith.addf %17, %18 : vector<8x128xf32>
    %c0_17 = arith.constant 0 : index
    %c0_18 = arith.constant 0 : index
    %20 = vector.load %arg14[%c0_17, %c0_18] : memref<8x128xf32, #tpu.memory_space<vmem>>, vector<8x128xf32>
    tpu.vector_store %arg14[%c0_17, %c0_18], %19 {strides = array<i32>} : memref<8x128xf32, #tpu.memory_space<vmem>>, vector<8x128xf32>,
    %c0_19 = arith.constant 0 : index
    %c0_20 = arith.constant 0 : index
    %21 = vector.load %arg8[%c0_19, %c0_20] : memref<128x128xf32, #tpu.memory_space<vmem>>, vector<128x128xf32>
    %c0_21 = arith.constant 0 : index
    %c0_22 = arith.constant 0 : index
    %22 = vector.load %arg9[%c0_21, %c0_22] : memref<1x128xf32, #tpu.memory_space<vmem>>, vector<1x128xf32>
    %cst_23 = arith.constant dense<0.000000e+00> : vector<8x128xf32>
    %23 = tpu.matmul %19, %21, %cst_23 {dimension_numbers = #tpu.dot_dimension_numbers<[1], [0], [0], [1], [0, 0, 1, 1], [], []>} : vector<8x128xf32>, vector<128x128xf32>, vector<8x128xf32> -> vector<8x128xf32>
    %24 = vector.broadcast %22 : vector<1x128xf32> to vector<8x128xf32>
    %25 = arith.addf %23, %24 : vector<8x128xf32>
    %cst_24 = arith.constant 0.000000e+00 : f32
    %26 = vector.broadcast %cst_24 : f32 to vector<8x128xf32>
    %27 = arith.maximumf %25, %26 : vector<8x128xf32>
    %c0_25 = arith.constant 0 : index
    %c0_26 = arith.constant 0 : index
    %28 = vector.load %arg10[%c0_25, %c0_26] : memref<128x128xf32, #tpu.memory_space<vmem>>, vector<128x128xf32>
    %c0_27 = arith.constant 0 : index
    %c0_28 = arith.constant 0 : index
    %29 = vector.load %arg11[%c0_27, %c0_28] : memref<1x128xf32, #tpu.memory_space<vmem>>, vector<1x128xf32>
    %cst_29 = arith.constant dense<0.000000e+00> : vector<8x128xf32>
    %30 = tpu.matmul %27, %28, %cst_29 {dimension_numbers = #tpu.dot_dimension_numbers<[1], [0], [0], [1], [0, 0, 1, 1], [], []>} : vector<8x128xf32>, vector<128x128xf32>, vector<8x128xf32> -> vector<8x128xf32>
    %31 = vector.broadcast %29 : vector<1x128xf32> to vector<8x128xf32>
    %32 = arith.addf %30, %31 : vector<8x128xf32>
    %cst_30 = arith.constant 0.000000e+00 : f32
    %33 = vector.broadcast %cst_30 : f32 to vector<8x128xf32>
    %34 = arith.maximumf %32, %33 : vector<8x128xf32>
    %c0_31 = arith.constant 0 : index
    %c0_32 = arith.constant 0 : index
    %35 = vector.load %arg12[%c0_31, %c0_32] : memref<128x128xf32, #tpu.memory_space<vmem>>, vector<128x128xf32>
    %c0_33 = arith.constant 0 : index
    %c0_34 = arith.constant 0 : index
    %36 = vector.load %arg13[%c0_33, %c0_34] : memref<1x128xf32, #tpu.memory_space<vmem>>, vector<1x128xf32>
    %cst_35 = arith.constant dense<0.000000e+00> : vector<8x128xf32>
    %37 = tpu.matmul %34, %35, %cst_35 {dimension_numbers = #tpu.dot_dimension_numbers<[1], [0], [0], [1], [0, 0, 1, 1], [], []>} : vector<8x128xf32>, vector<128x128xf32>, vector<8x128xf32> -> vector<8x128xf32>
    %38 = vector.broadcast %36 : vector<1x128xf32> to vector<8x128xf32>
    %39 = arith.addf %37, %38 : vector<8x128xf32>
    %c0_36 = arith.constant 0 : index
    %c0_37 = arith.constant 0 : index
    %40 = vector.load %arg15[%c0_36, %c0_37] : memref<8x128xf32, #tpu.memory_space<vmem>>, vector<8x128xf32>
    tpu.vector_store %arg15[%c0_36, %c0_37], %39 {strides = array<i32>} : memref<8x128xf32, #tpu.memory_space<vmem>>, vector<8x128xf32>,
    return
  }
  func.func @transform_0(%arg0: i32) -> (i32, i32) {
    %c0_i32 = arith.constant 0 : i32
    %c0_i32_0 = arith.constant 0 : i32
    return %arg0, %c0_i32 : i32, i32
  }
  func.func @transform_1(%arg0: i32) -> (i32, i32) {
    %c0_i32 = arith.constant 0 : i32
    %c0_i32_0 = arith.constant 0 : i32
    %c0_i32_1 = arith.constant 0 : i32
    return %c0_i32, %c0_i32_0 : i32, i32
  }
  func.func @transform_2(%arg0: i32) -> (i32, i32) {
    %c0_i32 = arith.constant 0 : i32
    %c0_i32_0 = arith.constant 0 : i32
    %c0_i32_1 = arith.constant 0 : i32
    return %c0_i32, %c0_i32_0 : i32, i32
  }
  func.func @transform_3(%arg0: i32) -> (i32, i32) {
    %c0_i32 = arith.constant 0 : i32
    %c0_i32_0 = arith.constant 0 : i32
    %c0_i32_1 = arith.constant 0 : i32
    return %c0_i32, %c0_i32_0 : i32, i32
  }
  func.func @transform_4(%arg0: i32) -> (i32, i32) {
    %c0_i32 = arith.constant 0 : i32
    %c0_i32_0 = arith.constant 0 : i32
    %c0_i32_1 = arith.constant 0 : i32
    return %c0_i32, %c0_i32_0 : i32, i32
  }
  func.func @transform_5(%arg0: i32) -> (i32, i32) {
    %c0_i32 = arith.constant 0 : i32
    %c0_i32_0 = arith.constant 0 : i32
    %c0_i32_1 = arith.constant 0 : i32
    return %c0_i32, %c0_i32_0 : i32, i32
  }
  func.func @transform_6(%arg0: i32) -> (i32, i32) {
    %c0_i32 = arith.constant 0 : i32
    %c0_i32_0 = arith.constant 0 : i32
    %c0_i32_1 = arith.constant 0 : i32
    return %c0_i32, %c0_i32_0 : i32, i32
  }
  func.func @transform_7(%arg0: i32) -> (i32, i32) {
    %c0_i32 = arith.constant 0 : i32
    %c0_i32_0 = arith.constant 0 : i32
    %c0_i32_1 = arith.constant 0 : i32
    return %c0_i32, %c0_i32_0 : i32, i32
  }
  func.func @transform_8(%arg0: i32) -> (i32, i32) {
    %c0_i32 = arith.constant 0 : i32
    %c0_i32_0 = arith.constant 0 : i32
    %c0_i32_1 = arith.constant 0 : i32
    return %c0_i32, %c0_i32_0 : i32, i32
  }
  func.func @transform_9(%arg0: i32) -> (i32, i32) {
    %c0_i32 = arith.constant 0 : i32
    %c0_i32_0 = arith.constant 0 : i32
    %c0_i32_1 = arith.constant 0 : i32
    return %c0_i32, %c0_i32_0 : i32, i32
  }
  func.func @transform_10(%arg0: i32) -> (i32, i32) {
    %c0_i32 = arith.constant 0 : i32
    %c0_i32_0 = arith.constant 0 : i32
    %c0_i32_1 = arith.constant 0 : i32
    return %c0_i32, %c0_i32_0 : i32, i32
  }
  func.func @transform_11(%arg0: i32) -> (i32, i32) {
    %c0_i32 = arith.constant 0 : i32
    %c0_i32_0 = arith.constant 0 : i32
    %c0_i32_1 = arith.constant 0 : i32
    return %c0_i32, %c0_i32_0 : i32, i32
  }
  func.func @transform_12(%arg0: i32) -> (i32, i32) {
    %c0_i32 = arith.constant 0 : i32
    %c0_i32_0 = arith.constant 0 : i32
    %c0_i32_1 = arith.constant 0 : i32
    return %c0_i32, %c0_i32_0 : i32, i32
  }
  func.func @transform_13(%arg0: i32) -> (i32, i32) {
    %c0_i32 = arith.constant 0 : i32
    %c0_i32_0 = arith.constant 0 : i32
    return %arg0, %c0_i32 : i32, i32
  }
  func.func @transform_14(%arg0: i32) -> (i32, i32) {
    %c0_i32 = arith.constant 0 : i32
    %c0_i32_0 = arith.constant 0 : i32
    return %arg0, %c0_i32 : i32, i32
  }
}

</mosaic_0001>

<bundles_post_ra>
// kernel: _fused_forward.1
= control target key start
LH: loop header
LB: loop body
LE: loop exit
PB: predicated region body
PF: predicated region fallthrough
CT: control target
= control target key end

     0   :  { %20 = vsyncpa [#allocation3], 0  ;;  %s1648_s0 = inlined_call_operand.vmem [shape: f32[8,128], index: 0, kind: input, shape index: {}]   ;;  %s1649_s1 = inlined_call_operand.hbm [shape: f32[128,128], index: 1, kind: input, shape index: {}]   ;;  %s1650_s2 = inlined_call_operand.vmem [shape: f32[1,128], index: 2, kind: input, shape index: {}]   ;;  %s1651_s3 = inlined_call_operand.hbm [shape: f32[128,128], index: 3, kind: input, shape index: {}]   ;;  %s1652_s4 = inlined_call_operand.vmem [shape: f32[1,128], index: 4, kind: input, shape index: {}]   ;;  %s1653_s5 = inlined_call_operand.hbm [shape: f32[128,128], index: 5, kind: input, shape index: {}]   ;;  %s1654_s6 = inlined_call_operand.vmem [shape: f32[1,128], index: 6, kind: input, shape index: {}]   ;;  %s1655_s7 = inlined_call_operand.hbm [shape: f32[128,128], index: 7, kind: input, shape index: {}]   ;;  %s1656_s8 = inlined_call_operand.vmem [shape: f32[1,128], index: 8, kind: input, shape index: {}]   ;;  %s1657_s9 = inlined_call_operand.hbm [shape: f32[128,128], index: 9, kind: input, shape index: {}]   ;;  %s1658_s10 = inlined_call_operand.vmem [shape: f32[1,128], index: 10, kind: input, shape index: {}]   ;;  %s1659_s11 = inlined_call_operand.hbm [shape: f32[128,128], index: 11, kind: input, shape index: {}]   ;;  %s1660_s12 = inlined_call_operand.vmem [shape: f32[1,128], index: 12, kind: input, shape index: {}]   ;;  %s1661_s13 = inlined_call_operand.vmem [shape: f32[8,128], index: 13, kind: output, shape index: {0}]   ;;  %s1662_s14 = inlined_call_operand.hbm [shape: f32[8,128], index: 14, kind: output, shape index: {1}]  }
   0x1   :  { %21 = vsyncpa [#allocation6], 0 }
   0x2   :  { %22 = vsyncpa [#allocation9], 0 }
   0x3   :  { %23 = vsyncpa [#allocation12], 0 }
   0x4   :  { %24 = vsyncpa [#allocation4], 0  ;;  %s1354_s29 = smov [#allocation5]   ;;  %s1355_s15 = smov [#allocation8]  }
   0x5   :  { %s46_s30 = sshll.u32 %s1354_s29, 4  ;;  %s74_s16 = sshll.u32 %s1355_s15, 4  ;;  %s47_s30 = int_to_ptr.vmem [resolvable:$true] %s46_s30  ;;  %s1441_s16 = int_to_ptr.vmem [resolvable:$true] %s74_s16 }
   0x6   :  { %s1190_s19 = scalar_lea.hbm %s1651_s3, 2048 }
   0x7   :  { %p1191_p0 = scmp.ne.s32.totalorder %s1651_s3, %s1190_s19  ;;  %p1194_p1 = scmp.lt.u32.totalorder %s1190_s19, %s1651_s3 }
   0x9   :  { %p1196_p2 = pnand %p1194_p1, %p1191_p0 }
   0xb   :  { %1199 = shalt.err (!%p1196_p2)
}
   0xc   :  { %s1200_s24 = scalar_lea.vmem %s47_s30, 2048  ;;  %p1205_p4 = scmp.lt.s32.totalorder %s47_s30, %s47_s30 }
   0xd   :  { %p1201_p3 = scmp.ne.s32.totalorder %s47_s30, %s1200_s24  ;;  %p1206_p5 = scmp.lt.s32.totalorder %s1200_s24, %s1200_s24 }
   0xf   :  { %p1207_p6 = por %p1206_p5, %p1205_p4 }
  0x11   :  { %p1208_p7 = pnand %p1207_p6, %p1201_p3 }
  0x13   :  { %1211 = shalt.err (!%p1208_p7)
}
  0x14   :  { %s1356_s25 = smov 128   ;;  %s1357_s26 = smov 8  }
  0x15   :  { %52 = dma.hbm_to_vmem [thread:$0]  %s1651_s3, 2048, %s47_s30, [#allocation6], %s1356_s25, %s1356_s25, %s1357_s26  }
  0x16   :  { %s1212_s17 = scalar_lea.hbm %s1655_s7, 2048 }
  0x17   :  { %p1213_p8 = scmp.ne.s32.totalorder %s1655_s7, %s1212_s17  ;;  %p1216_p9 = scmp.lt.u32.totalorder %s1212_s17, %s1655_s7 }
  0x19   :  { %p1218_p10 = pnand %p1216_p9, %p1213_p8 }
  0x1b   :  { %1221 = shalt.err (!%p1218_p10)
}
  0x1c   :  { %s1222_s22 = scalar_lea.vmem %s1441_s16, 2048  ;;  %p1227_p12 = scmp.lt.s32.totalorder %s1441_s16, %s1441_s16 }
  0x1d   :  { %p1223_p11 = scmp.ne.s32.totalorder %s1441_s16, %s1222_s22  ;;  %p1228_p13 = scmp.lt.s32.totalorder %s1222_s22, %s1222_s22 }
  0x1f   :  { %p1229_p0 = por %p1228_p13, %p1227_p12 }
  0x21   :  { %p1230_p1 = pnand %p1229_p0, %p1223_p11 }
  0x23   :  { %1233 = shalt.err (!%p1230_p1)
}
  0x24   :  { %80 = dma.hbm_to_vmem [thread:$0]  %s1655_s7, 2048, %s1441_s16, [#allocation9], %s1356_s25, %s1356_s25, %s1357_s26  }
  0x25   :  { %s1358_s23 = smov [#allocation2]   ;;  %s1359_s27 = smov [#allocation7]  }
  0x26   :  { %s32_s24 = sshll.u32 %s1358_s23, 4  ;;  %s60_s28 = sshll.u32 %s1359_s27, 4  ;;  %s33_s24 = int_to_ptr.vmem [resolvable:$true] %s32_s24  ;;  %s1478_s28 = int_to_ptr.vmem [resolvable:$true] %s60_s28 }
  0x27   :  { %s1234_s17 = scalar_lea.hbm %s1649_s1, 2048 }
  0x28   :  { %p1235_p2 = scmp.ne.s32.totalorder %s1649_s1, %s1234_s17  ;;  %p1238_p3 = scmp.lt.u32.totalorder %s1234_s17, %s1649_s1 }
  0x2a   :  { %p1240_p4 = pnand %p1238_p3, %p1235_p2 }
  0x2c   :  { %1243 = shalt.err (!%p1240_p4)
}
  0x2d   :  { %s1244_s7 = scalar_lea.vmem %s33_s24, 2048  ;;  %p1249_p6 = scmp.lt.s32.totalorder %s33_s24, %s33_s24 }
  0x2e   :  { %p1245_p5 = scmp.ne.s32.totalorder %s33_s24, %s1244_s7  ;;  %p1250_p7 = scmp.lt.s32.totalorder %s1244_s7, %s1244_s7 }
  0x30   :  { %p1251_p8 = por %p1250_p7, %p1249_p6 }
  0x32   :  { %p1252_p9 = pnand %p1251_p8, %p1245_p5 }
  0x34   :  { %1255 = shalt.err (!%p1252_p9)
}
  0x35   :  { %38 = dma.hbm_to_vmem [thread:$0]  %s1649_s1, 2048, %s33_s24, [#allocation3], %s1356_s25, %s1356_s25, %s1357_s26  }
  0x36   :  { %s1256_s23 = scalar_lea.hbm %s1653_s5, 2048 }
  0x37   :  { %p1257_p10 = scmp.ne.s32.totalorder %s1653_s5, %s1256_s23  ;;  %p1260_p11 = scmp.lt.u32.totalorder %s1256_s23, %s1653_s5 }
  0x39   :  { %p1262_p12 = pnand %p1260_p11, %p1257_p10 }
  0x3b   :  { %1265 = shalt.err (!%p1262_p12)
}
  0x3c   :  { %s1266_s18 = scalar_lea.vmem %s1478_s28, 2048  ;;  %p1271_p0 = scmp.lt.s32.totalorder %s1478_s28, %s1478_s28 }
  0x3d   :  { %p1267_p13 = scmp.ne.s32.totalorder %s1478_s28, %s1266_s18  ;;  %p1272_p1 = scmp.lt.s32.totalorder %s1266_s18, %s1266_s18 }
  0x3f   :  { %p1273_p2 = por %p1272_p1, %p1271_p0 }
  0x41   :  { %p1274_p3 = pnand %p1273_p2, %p1267_p13 }
  0x43   :  { %1277 = shalt.err (!%p1274_p3)
}
  0x44   :  { %66 = dma.hbm_to_vmem [thread:$0]  %s1653_s5, 2048, %s1478_s28, [#allocation6], %s1356_s25, %s1356_s25, %s1357_s26  }
  0x45   :  { %s1360_s19 = smov [#allocation10]   ;;  %s1361_s21 = smov [#allocation11]  }
  0x46   :  { %s88_s20 = sshll.u32 %s1360_s19, 4  ;;  %s102_s7 = sshll.u32 %s1361_s21, 4  ;;  %s89_s20 = int_to_ptr.vmem [resolvable:$true] %s88_s20  ;;  %s1515_s7 = int_to_ptr.vmem [resolvable:$true] %s102_s7 }
  0x47   :  { %s1278_s3 = scalar_lea.hbm %s1657_s9, 2048 }
  0x48   :  { %p1279_p4 = scmp.ne.s32.totalorder %s1657_s9, %s1278_s3  ;;  %p1282_p5 = scmp.lt.u32.totalorder %s1278_s3, %s1657_s9 }
  0x4a   :  { %p1284_p6 = pnand %p1282_p5, %p1279_p4 }
  0x4c   :  { %1287 = shalt.err (!%p1284_p6)
}
  0x4d   :  { %s1288_s5 = scalar_lea.vmem %s89_s20, 2048  ;;  %p1293_p8 = scmp.lt.s32.totalorder %s89_s20, %s89_s20 }
  0x4e   :  { %p1289_p7 = scmp.ne.s32.totalorder %s89_s20, %s1288_s5  ;;  %p1294_p9 = scmp.lt.s32.totalorder %s1288_s5, %s1288_s5 }
  0x50   :  { %p1295_p10 = por %p1294_p9, %p1293_p8 }
  0x52   :  { %p1296_p11 = pnand %p1295_p10, %p1289_p7 }
  0x54   :  { %1299 = shalt.err (!%p1296_p11)
}
  0x55   :  { %94 = dma.hbm_to_vmem [thread:$0]  %s1657_s9, 2048, %s89_s20, [#allocation9], %s1356_s25, %s1356_s25, %s1357_s26  }
  0x56   :  { %s1300_s1 = scalar_lea.hbm %s1659_s11, 2048 }
  0x57   :  { %p1301_p12 = scmp.ne.s32.totalorder %s1659_s11, %s1300_s1  ;;  %p1304_p13 = scmp.lt.u32.totalorder %s1300_s1, %s1659_s11 }
  0x59   :  { %p1306_p0 = pnand %p1304_p13, %p1301_p12 }
  0x5b   :  { %1309 = shalt.err (!%p1306_p0)
}
  0x5c   :  { %s1310_s22 = scalar_lea.vmem %s1515_s7, 2048  ;;  %p1315_p2 = scmp.lt.s32.totalorder %s1515_s7, %s1515_s7 }
  0x5d   :  { %p1311_p1 = scmp.ne.s32.totalorder %s1515_s7, %s1310_s22  ;;  %p1316_p3 = scmp.lt.s32.totalorder %s1310_s22, %s1310_s22 }
  0x5f   :  { %p1317_p4 = por %p1316_p3, %p1315_p2 }
  0x61   :  { %p1318_p5 = pnand %p1317_p4, %p1311_p1 }
  0x63   :  { %1321 = shalt.err (!%p1318_p5)
}
  0x64   :  { %108 = dma.hbm_to_vmem [thread:$0]  %s1659_s11, 2048, %s1515_s7, [#allocation12], %s1356_s25, %s1356_s25, %s1357_s26  }
  0x65   :  { %1344 = dma.done.wait [#allocation3], 2048  }
  0x66   :  { %1345 = vsyncadd [#allocation3], 4294965248 }
  0x67   :  { %1346 = dma.done.wait [#allocation6], 4096  }
  0x68   :  { %1347 = vsyncadd [#allocation6], 4294963200 }
  0x69   :  { %1348 = dma.done.wait [#allocation9], 4096  }
  0x6a   :  { %1349 = vsyncadd [#allocation9], 4294963200 }
  0x6b   :  { %1350 = dma.done.wait [#allocation12], 2048  }
  0x6c   :  { %1351 = vsyncadd [#allocation12], 4294965248  ;;  %v1362_v0 = vmov 0.0|0.0   ;;  %vm1363_vm0 = vmmov 0   ;;  %v1364_v1 = vmov 0.0   ;;  %v130_v2 = vld [vmem:[#allocation2] sm:$0xff] }
  0x6d   :  { %1034 = vmatprep.subr.bf16.mxu0 %v1362_v0  ;;  %856 = vmatprep.mubr.msk.f32.mxu0 %vm1363_vm0, %v1364_v1  ;;  %v131_v3 = vld [vmem:[#allocation2 + $0x8] sm:$0xff]  ;;  %v132_v4 = vld [vmem:[#allocation2 + $0x10] sm:$0xff]  ;;  %v133_v6 = vld [vmem:[#allocation2 + $0x18] sm:$0xff]  ;;  %s1365_s28 = smov [#allocation13]  }
  0x6e   :  { %1058 = vmatprep.subr.bf16.mxu1 %v1362_v0  ;;  %891 = vmatprep.mubr.msk.f32.mxu1 %vm1363_vm0, %v1364_v1  ;;  %v1035_v5 = vpack.c.bf16 %v131_v3, %v130_v2  ;;  %v1038_v7 = vpack.c.bf16 %v133_v6, %v132_v4  ;;  %v134_v8 = vld [vmem:[#allocation2 + $0x20] sm:$0xff]  ;;  %v135_v9 = vld [vmem:[#allocation2 + $0x28] sm:$0xff]  ;;  %v226_v12 = vld [vmem:[#allocation5 + $0x10] sm:$0xff]  ;;  %s702_s15 = sshll.u32 %s1365_s28, 4  ;;  %s703_s15 = int_to_ptr.vmem [resolvable:$true] %s702_s15 }
  0x6f   :  { %v224_v10 = vld [vmem:[#allocation5] sm:$0xff]  ;;  %v225_v11 = vld [vmem:[#allocation5 + $0x8] sm:$0xff]  ;;  %v227_v13 = vld [vmem:[#allocation5 + $0x18] sm:$0xff]  ;;  %v1041_v14 = vpack.c.bf16 %v135_v9, %v134_v8  ;;  %s1322_s17 = scalar_lea.vmem %s703_s15, 128  ;;  %p1327_p7 = scmp.lt.s32.totalorder %s703_s15, %s703_s15 }
  0x70   :  { %1036 = vmatpush3.bf16.msra.mxu0 %v1035_v5  ;;  %v1059_v15 = vpack.c.bf16 %v225_v11, %v224_v10  ;;  %v136_v16 = vld [vmem:[#allocation2 + $0x30] sm:$0xff]  ;;  %v137_v17 = vld [vmem:[#allocation2 + $0x38] sm:$0xff]  ;;  %v1062_v18 = vpack.c.bf16 %v227_v13, %v226_v12  ;;  %v228_v19 = vld [vmem:[#allocation5 + $0x20] sm:$0xff]  ;;  %p1323_p6 = scmp.ne.s32.totalorder %s703_s15, %s1322_s17  ;;  %p1328_p8 = scmp.lt.s32.totalorder %s1322_s17, %s1322_s17 }
  0x71   :  { %1037 = vmatprep.subr.bf16.mxu0 %v1362_v0  ;;  %v229_v20 = vld [vmem:[#allocation5 + $0x28] sm:$0xff]  ;;  %v1044_v21 = vpack.c.bf16 %v137_v17, %v136_v16  ;;  %v138_v22 = vld [vmem:[#allocation2 + $0x40] sm:$0xff]  ;;  %v230_v25 = vld [vmem:[#allocation5 + $0x30] sm:$0xff] }
  0x72   :  { %1060 = vmatpush3.bf16.msra.mxu1 %v1059_v15  ;;  %v139_v23 = vld [vmem:[#allocation2 + $0x48] sm:$0xff]  ;;  %v1065_v24 = vpack.c.bf16 %v229_v20, %v228_v19  ;;  %v231_v26 = vld [vmem:[#allocation5 + $0x38] sm:$0xff]  ;;  %v140_v28 = vld [vmem:[#allocation2 + $0x50] sm:$0xff]  ;;  %p1329_p9 = por %p1328_p8, %p1327_p7 }
  0x73   :  { %1061 = vmatprep.subr.bf16.mxu1 %v1362_v0  ;;  %v1047_v27 = vpack.c.bf16 %v139_v23, %v138_v22  ;;  %v141_v29 = vld [vmem:[#allocation2 + $0x58] sm:$0xff]  ;;  %v1068_v30 = vpack.c.bf16 %v231_v26, %v230_v25  ;;  %v232_v31 = vld [vmem:[#allocation5 + $0x40] sm:$0xff]  ;;  %v233_v32 = vld [vmem:[#allocation5 + $0x48] sm:$0xff] }
  0x74   :  { %1039 = vmatpush3.bf16.msra.mxu0 %v1038_v7  ;;  %v1050_v33 = vpack.c.bf16 %v141_v29, %v140_v28  ;;  %v142_v34 = vld [vmem:[#allocation2 + $0x60] sm:$0xff]  ;;  %v143_v35 = vld [vmem:[#allocation2 + $0x68] sm:$0xff]  ;;  %v1071_v36 = vpack.c.bf16 %v233_v32, %v232_v31  ;;  %v234_v37 = vld [vmem:[#allocation5 + $0x50] sm:$0xff]  ;;  %p1330_p10 = pnand %p1329_p9, %p1323_p6 }
  0x75   :  { %1040 = vmatprep.subr.bf16.mxu0 %v1362_v0  ;;  %v235_v38 = vld [vmem:[#allocation5 + $0x58] sm:$0xff]  ;;  %v1053_v39 = vpack.c.bf16 %v143_v35, %v142_v34  ;;  %v144_v40 = vld [vmem:[#allocation2 + $0x70] sm:$0xff]  ;;  %v236_v43 = vld [vmem:[#allocation5 + $0x60] sm:$0xff] }
  0x76   :  { %1063 = vmatpush3.bf16.msra.mxu1 %v1062_v18  ;;  %v145_v41 = vld [vmem:[#allocation2 + $0x78] sm:$0xff]  ;;  %v1074_v42 = vpack.c.bf16 %v235_v38, %v234_v37  ;;  %v237_v44 = vld [vmem:[#allocation5 + $0x68] sm:$0xff]  ;;  %v129_v47 = vld [vmem:[%s1648_s0] sm:$0xff] }
  0x77   :  { %1064 = vmatprep.subr.bf16.mxu1 %v1362_v0  ;;  %v1056_v45 = vpack.c.bf16 %v145_v41, %v144_v40  ;;  %v1077_v46 = vpack.c.bf16 %v237_v44, %v236_v43  ;;  %v238_v48 = vld [vmem:[#allocation5 + $0x70] sm:$0xff]  ;;  %v239_v49 = vld [vmem:[#allocation5 + $0x78] sm:$0xff]  ;;  %v318_v51 = vld [vmem:[#allocation7] sm:$0xff] }
  0x78   :  { %1042 = vmatpush3.bf16.msra.mxu0 %v1041_v14  ;;  %v1080_v50 = vpack.c.bf16 %v239_v49, %v238_v48  ;;  %v319_v52 = vld [vmem:[#allocation7 + $0x8] sm:$0xff]  ;;  %v320_v53 = vld [vmem:[#allocation7 + $0x10] sm:$0xff]  ;;  %v321_v55 = vld [vmem:[#allocation7 + $0x18] sm:$0xff] }
  0x79   :  { %1043 = vmatprep.subr.bf16.mxu0 %v1362_v0  ;;  %v1083_v54 = vpack.c.bf16 %v319_v52, %v318_v51  ;;  %v1086_v56 = vpack.c.bf16 %v321_v55, %v320_v53  ;;  %v322_v57 = vld [vmem:[#allocation7 + $0x20] sm:$0xff]  ;;  %v323_v58 = vld [vmem:[#allocation7 + $0x28] sm:$0xff]  ;;  %v324_v60 = vld [vmem:[#allocation7 + $0x30] sm:$0xff] }
  0x7a   :  { %1066 = vmatpush3.bf16.msra.mxu1 %v1065_v24  ;;  %v1089_v59 = vpack.c.bf16 %v323_v58, %v322_v57  ;;  %v325_v61 = vld [vmem:[#allocation7 + $0x38] sm:$0xff]  ;;  %v326_v63 = vld [vmem:[#allocation7 + $0x40] sm:$0xff]  ;;  %v327_v2 = vld [vmem:[#allocation7 + $0x48] sm:$0xff] }
  0x7b   :  { %1067 = vmatprep.subr.bf16.mxu1 %v1362_v0  ;;  %v1092_v62 = vpack.c.bf16 %v325_v61, %v324_v60  ;;  %v1095_v3 = vpack.c.bf16 %v327_v2, %v326_v63  ;;  %v328_v4 = vld [vmem:[#allocation7 + $0x50] sm:$0xff]  ;;  %v329_v5 = vld [vmem:[#allocation7 + $0x58] sm:$0xff]  ;;  %v330_v7 = vld [vmem:[#allocation7 + $0x60] sm:$0xff] }
  0x7c   :  { %1045 = vmatpush3.bf16.msra.mxu0 %v1044_v21  ;;  %v1098_v6 = vpack.c.bf16 %v329_v5, %v328_v4  ;;  %v331_v8 = vld [vmem:[#allocation7 + $0x68] sm:$0xff]  ;;  %v716_v10 = vld [vmem:[%s1650_s2] ss:$0 sm:$0xff]  ;;  %v332_v15 = vld [vmem:[#allocation7 + $0x70] sm:$0xff] }
  0x7d   :  { %1046 = vmatprep.subr.bf16.mxu0 %v1362_v0  ;;  %v1101_v9 = vpack.c.bf16 %v331_v8, %v330_v7  ;;  %v333_v16 = vld [vmem:[#allocation7 + $0x78] sm:$0xff]  ;;  %v412_v18 = vld [vmem:[#allocation8] sm:$0xff]  ;;  %v413_v19 = vld [vmem:[#allocation8 + $0x8] sm:$0xff] }
  0x7e   :  { %1069 = vmatpush3.bf16.msra.mxu1 %v1068_v30  ;;  %v1104_v17 = vpack.c.bf16 %v333_v16, %v332_v15  ;;  %v414_v20 = vld [vmem:[#allocation8 + $0x10] sm:$0xff]  ;;  %v1107_v21 = vpack.c.bf16 %v413_v19, %v412_v18  ;;  %v415_v22 = vld [vmem:[#allocation8 + $0x18] sm:$0xff]  ;;  %v416_v24 = vld [vmem:[#allocation8 + $0x20] sm:$0xff] }
  0x7f   :  { %1070 = vmatprep.subr.bf16.mxu1 %v1362_v0  ;;  %v1110_v23 = vpack.c.bf16 %v415_v22, %v414_v20  ;;  %v417_v25 = vld [vmem:[#allocation8 + $0x28] sm:$0xff]  ;;  %v419_v28 = vld [vmem:[#allocation8 + $0x38] sm:$0xff]  ;;  %v420_v30 = vld [vmem:[#allocation8 + $0x40] sm:$0xff] }
  0x80   :  { %1048 = vmatpush3.bf16.msra.mxu0 %v1047_v27  ;;  %v1113_v26 = vpack.c.bf16 %v417_v25, %v416_v24  ;;  %v418_v27 = vld [vmem:[#allocation8 + $0x30] sm:$0xff]  ;;  %v421_v31 = vld [vmem:[#allocation8 + $0x48] sm:$0xff]  ;;  %v423_v34 = vld [vmem:[#allocation8 + $0x58] sm:$0xff] }
  0x81   :  { %1049 = vmatprep.subr.bf16.mxu0 %v1362_v0  ;;  %v1116_v29 = vpack.c.bf16 %v419_v28, %v418_v27  ;;  %v1119_v32 = vpack.c.bf16 %v421_v31, %v420_v30  ;;  %v425_v37 = vld [vmem:[#allocation8 + $0x68] sm:$0xff]  ;;  %v426_v44 = vld [vmem:[#allocation8 + $0x70] sm:$0xff]  ;;  %v509_v51 = vld [vmem:[#allocation10 + $0x18] sm:$0xff] }
  0x82   :  { %1072 = vmatpush3.bf16.msra.mxu1 %v1071_v36  ;;  %v424_v36 = vld [vmem:[#allocation8 + $0x60] sm:$0xff]  ;;  %v507_v48 = vld [vmem:[#allocation10 + $0x8] sm:$0xff]  ;;  %v508_v49 = vld [vmem:[#allocation10 + $0x10] sm:$0xff] }
  0x83   :  { %1073 = vmatprep.subr.bf16.mxu1 %v1362_v0  ;;  %v1125_v38 = vpack.c.bf16 %v425_v37, %v424_v36  ;;  %v1134_v52 = vpack.c.bf16 %v509_v51, %v508_v49  ;;  %v510_v53 = vld [vmem:[#allocation10 + $0x20] sm:$0xff]  ;;  %v513_v57 = vld [vmem:[#allocation10 + $0x38] sm:$0xff]  ;;  %v515_v60 = vld [vmem:[#allocation10 + $0x48] sm:$0xff] }
  0x84   :  { %1051 = vmatpush3.bf16.msra.mxu0 %v1050_v33  ;;  %v422_v33 = vld [vmem:[#allocation8 + $0x50] sm:$0xff]  ;;  %v517_v63 = vld [vmem:[#allocation10 + $0x58] sm:$0xff]  ;;  %v519_v4 = vld [vmem:[#allocation10 + $0x68] sm:$0xff] }
  0x85   :  { %1052 = vmatprep.subr.bf16.mxu0 %v1362_v0  ;;  %v1122_v35 = vpack.c.bf16 %v423_v34, %v422_v33  ;;  %v602_v15 = vld [vmem:[#allocation11 + $0x10] sm:$0xff]  ;;  %v604_v19 = vld [vmem:[#allocation11 + $0x20] sm:$0xff]  ;;  %v605_v20 = vld [vmem:[#allocation11 + $0x28] sm:$0xff] }
  0x86   :  { %1075 = vmatpush3.bf16.msra.mxu1 %v1074_v42  ;;  %v607_v22 = vld [vmem:[#allocation11 + $0x38] sm:$0xff]  ;;  %v608_v24 = vld [vmem:[#allocation11 + $0x40] sm:$0xff]  ;;  %v609_v25 = vld [vmem:[#allocation11 + $0x48] sm:$0xff] }
  0x87   :  { %1076 = vmatprep.subr.bf16.mxu1 %v1362_v0  ;;  %v610_v27 = vld [vmem:[#allocation11 + $0x50] sm:$0xff]  ;;  %v611_v28 = vld [vmem:[#allocation11 + $0x58] sm:$0xff]  ;;  %v612_v30 = vld [vmem:[#allocation11 + $0x60] sm:$0xff] }
  0x88   :  { %1054 = vmatpush3.bf16.msra.mxu0 %v1053_v39  ;;  %v717_v39 = vld [vmem:[%s1652_s4] ss:$0 sm:$0xff]  ;;  %v613_v31 = vld [vmem:[#allocation11 + $0x68] sm:$0xff] }
  0x89   :  { %1055 = vmatprep.subr.bf16.mxu0 %v1362_v0  ;;  %v719_v33 = vld [vmem:[%s1656_s8] ss:$0 sm:$0xff] }
  0x8a   :  { %1078 = vmatpush3.bf16.msra.mxu1 %v1077_v46 }
  0x8b   :  { %1079 = vmatprep.subr.bf16.mxu1 %v1362_v0 }
  0x8c   :  { %1057 = vmatpush3.bf16.msra.mxu0 %v1056_v45  ;;  %v427_v45 = vld [vmem:[#allocation8 + $0x78] sm:$0xff] }
  0x8d   :  { %1082 = vmatprep.subr.bf16.mxu0 %v1362_v0  ;;  %v1128_v46 = vpack.c.bf16 %v427_v45, %v426_v44  ;;  %v721_v45 = vld [vmem:[%s1660_s12] ss:$0 sm:$0xff] }
  0x8e   :  { %1081 = vmatpush3.bf16.msra.mxu1 %v1080_v50 }
  0x8f   :  { %857 = vmatmul.mubr.f32.vlgmr.msra.gmra.mrb[0].mxu0 %v129_v47  ;;  %1106 = vmatprep.subr.bf16.mxu1 %v1362_v0  ;;  %v506_v47 = vld [vmem:[#allocation10] sm:$0xff] }
  0x90   :  { %926 = vmatprep.mubr.msk.f32.mxu0 %vm1363_vm0, %v1364_v1  ;;  %1084 = vmatpush3.bf16.msra.mxu0 %v1083_v54  ;;  %v1131_v50 = vpack.c.bf16 %v507_v48, %v506_v47  ;;  %v511_v54 = vld [vmem:[#allocation10 + $0x28] sm:$0xff] }
  0x91   :  { %1085 = vmatprep.subr.bf16.mxu0 %v1362_v0  ;;  %v1137_v55 = vpack.c.bf16 %v511_v54, %v510_v53 }
  0x94   :  { %1087 = vmatpush3.bf16.msra.mxu0 %v1086_v56  ;;  %v512_v56 = vld [vmem:[#allocation10 + $0x30] sm:$0xff] }
  0x95   :  { %1088 = vmatprep.subr.bf16.mxu0 %v1362_v0  ;;  %v1140_v58 = vpack.c.bf16 %v513_v57, %v512_v56 }
  0x98   :  { %1090 = vmatpush3.bf16.msra.mxu0 %v1089_v59  ;;  %v514_v59 = vld [vmem:[#allocation10 + $0x40] sm:$0xff] }
  0x99   :  { %1091 = vmatprep.subr.bf16.mxu0 %v1362_v0  ;;  %v1143_v61 = vpack.c.bf16 %v515_v60, %v514_v59 }
  0x9c   :  { %1093 = vmatpush3.bf16.msra.mxu0 %v1092_v62  ;;  %v516_v62 = vld [vmem:[#allocation10 + $0x50] sm:$0xff] }
  0x9d   :  { %1094 = vmatprep.subr.bf16.mxu0 %v1362_v0  ;;  %v1146_v2 = vpack.c.bf16 %v517_v63, %v516_v62 }
  0xa0   :  { %1096 = vmatpush3.bf16.msra.mxu0 %v1095_v3  ;;  %v518_v3 = vld [vmem:[#allocation10 + $0x60] sm:$0xff] }
  0xa1   :  { %1097 = vmatprep.subr.bf16.mxu0 %v1362_v0  ;;  %v1149_v5 = vpack.c.bf16 %v519_v4, %v518_v3 }
  0xa4   :  { %1099 = vmatpush3.bf16.msra.mxu0 %v1098_v6  ;;  %v718_v6 = vld [vmem:[%s1654_s6] ss:$0 sm:$0xff] }
  0xa5   :  { %1100 = vmatprep.subr.bf16.mxu0 %v1362_v0 }
  0xa8   :  { %1102 = vmatpush3.bf16.msra.mxu0 %v1101_v9 }
  0xa9   :  { %1103 = vmatprep.subr.bf16.mxu0 %v1362_v0 }
  0xac   :  { %1105 = vmatpush3.bf16.msra.mxu0 %v1104_v17  ;;  %v603_v17 = vld [vmem:[#allocation11 + $0x18] sm:$0xff] }
  0xad   :  { %1130 = vmatprep.subr.bf16.mxu0 %v1362_v0  ;;  %v1158_v18 = vpack.c.bf16 %v603_v17, %v602_v15 }
 0x162   :  { %v219_v11 = vpop.f32.mrb[0].mxu0 }
 0x163   :  { %v220_v12 = vadd.f32 %v716_v10, %v219_v11  ;;  %v858_v13 = vpop.f32.mrb[1].mxu0  ;;  %v520_v10 = vld [vmem:[#allocation10 + $0x70] sm:$0xff]  ;;  %v521_v11 = vld [vmem:[#allocation10 + $0x78] sm:$0xff] }
 0x164   :  { %v600_v13 = vld [vmem:[#allocation11] sm:$0xff] }
 0x165   :  { %v223_v14 = vmax.f32 %v220_v12, 0.0  ;;  %v1152_v12 = vpack.c.bf16 %v521_v11, %v520_v10 }
 0x167   :  { %892 = vmatmul.mubr.f32.vlgmr.msra.gmra.mrb[0].mxu1 %v223_v14  ;;  %v601_v14 = vld [vmem:[#allocation11 + $0x8] sm:$0xff] }
 0x168   :  { %961 = vmatprep.mubr.msk.f32.mxu1 %vm1363_vm0, %v1364_v1  ;;  %1108 = vmatpush3.bf16.msra.mxu1 %v1107_v21  ;;  %v1155_v16 = vpack.c.bf16 %v601_v14, %v600_v13  ;;  %v1161_v21 = vpack.c.bf16 %v605_v20, %v604_v19 }
 0x169   :  { %1109 = vmatprep.subr.bf16.mxu1 %v1362_v0 }
 0x16c   :  { %1111 = vmatpush3.bf16.msra.mxu1 %v1110_v23 }
 0x16d   :  { %1112 = vmatprep.subr.bf16.mxu1 %v1362_v0 }
 0x170   :  { %1114 = vmatpush3.bf16.msra.mxu1 %v1113_v26  ;;  %v1167_v26 = vpack.c.bf16 %v609_v25, %v608_v24 }
 0x171   :  { %1115 = vmatprep.subr.bf16.mxu1 %v1362_v0 }
 0x174   :  { %1117 = vmatpush3.bf16.msra.mxu1 %v1116_v29  ;;  %v1170_v29 = vpack.c.bf16 %v611_v28, %v610_v27 }
 0x175   :  { %1118 = vmatprep.subr.bf16.mxu1 %v1362_v0 }
 0x178   :  { %1120 = vmatpush3.bf16.msra.mxu1 %v1119_v32  ;;  %v1173_v32 = vpack.c.bf16 %v613_v31, %v612_v30 }
 0x179   :  { %1121 = vmatprep.subr.bf16.mxu1 %v1362_v0 }
 0x17c   :  { %1123 = vmatpush3.bf16.msra.mxu1 %v1122_v35 }
 0x17d   :  { %1124 = vmatprep.subr.bf16.mxu1 %v1362_v0 }
 0x180   :  { %1126 = vmatpush3.bf16.msra.mxu1 %v1125_v38  ;;  %v614_v38 = vld [vmem:[#allocation11 + $0x70] sm:$0xff] }
 0x181   :  { %1127 = vmatprep.subr.bf16.mxu1 %v1362_v0 }
 0x184   :  { %1129 = vmatpush3.bf16.msra.mxu1 %v1128_v46 }
 0x185   :  { %1154 = vmatprep.subr.bf16.mxu1 %v1362_v0 }
 0x23a   :  { %v313_v40 = vpop.f32.mrb[0].mxu1 }
 0x23b   :  { %v314_v41 = vadd.f32 %v717_v39, %v313_v40  ;;  %v893_v42 = vpop.f32.mrb[1].mxu1  ;;  %v615_v39 = vld [vmem:[#allocation11 + $0x78] sm:$0xff] }
 0x23c   :  { %v1176_v40 = vpack.c.bf16 %v615_v39, %v614_v38 }
 0x23d   :  { %v317_v43 = vmax.f32 %v314_v41, 0.0  ;;  %v720_v41 = vld [vmem:[%s1658_s10] ss:$0 sm:$0xff] }
 0x23f   :  { %927 = vmatmul.mubr.f32.vlgmr.msra.gmra.mrb[2].mxu0 %v317_v43 }
 0x240   :  { %996 = vmatprep.mubr.msk.f32.mxu0 %vm1363_vm0, %v1364_v1  ;;  %1132 = vmatpush3.bf16.msra.mxu0 %v1131_v50 }
 0x241   :  { %1133 = vmatprep.subr.bf16.mxu0 %v1362_v0 }
 0x244   :  { %1135 = vmatpush3.bf16.msra.mxu0 %v1134_v52 }
 0x245   :  { %1136 = vmatprep.subr.bf16.mxu0 %v1362_v0 }
 0x248   :  { %1138 = vmatpush3.bf16.msra.mxu0 %v1137_v55 }
 0x249   :  { %1139 = vmatprep.subr.bf16.mxu0 %v1362_v0 }
 0x24c   :  { %1141 = vmatpush3.bf16.msra.mxu0 %v1140_v58 }
 0x24d   :  { %1142 = vmatprep.subr.bf16.mxu0 %v1362_v0 }
 0x250   :  { %1144 = vmatpush3.bf16.msra.mxu0 %v1143_v61 }
 0x251   :  { %1145 = vmatprep.subr.bf16.mxu0 %v1362_v0 }
 0x254   :  { %1147 = vmatpush3.bf16.msra.mxu0 %v1146_v2 }
 0x255   :  { %1148 = vmatprep.subr.bf16.mxu0 %v1362_v0 }
 0x258   :  { %1150 = vmatpush3.bf16.msra.mxu0 %v1149_v5 }
 0x259   :  { %1151 = vmatprep.subr.bf16.mxu0 %v1362_v0 }
 0x25c   :  { %1153 = vmatpush3.bf16.msra.mxu0 %v1152_v12 }
 0x312   :  { %v407_v7 = vpop.f32.mrb[2].mxu0 }
 0x313   :  { %v408_v8 = vadd.f32 %v718_v6, %v407_v7  ;;  %v928_v9 = vpop.f32.mrb[3].mxu0 }
 0x315   :  { %411 = vst [vmem:[%s1661_s13] sm:$0xff] %v408_v8  ;;  %962 = vmatmul.mubr.f32.vlgmr.msra.gmra.mrb[2].mxu1 %v408_v8 }
 0x316   :  { %1031 = vmatprep.mubr.msk.f32.mxu1 %vm1363_vm0, %v1364_v1  ;;  %1156 = vmatpush3.bf16.msra.mxu1 %v1155_v16  ;;  %v606_v1 = vld [vmem:[#allocation11 + $0x30] sm:$0xff] }
 0x317   :  { %1157 = vmatprep.subr.bf16.mxu1 %v1362_v0  ;;  %v1164_v23 = vpack.c.bf16 %v607_v22, %v606_v1 }
 0x31a   :  { %1159 = vmatpush3.bf16.msra.mxu1 %v1158_v18 }
 0x31b   :  { %1160 = vmatprep.subr.bf16.mxu1 %v1362_v0 }
 0x31e   :  { %1162 = vmatpush3.bf16.msra.mxu1 %v1161_v21 }
 0x31f   :  { %1163 = vmatprep.subr.bf16.mxu1 %v1362_v0 }
 0x322   :  { %1165 = vmatpush3.bf16.msra.mxu1 %v1164_v23 }
 0x323   :  { %1166 = vmatprep.subr.bf16.mxu1 %v1362_v0 }
 0x326   :  { %1168 = vmatpush3.bf16.msra.mxu1 %v1167_v26 }
 0x327   :  { %1169 = vmatprep.subr.bf16.mxu1 %v1362_v0 }
 0x32a   :  { %1171 = vmatpush3.bf16.msra.mxu1 %v1170_v29 }
 0x32b   :  { %1172 = vmatprep.subr.bf16.mxu1 %v1362_v0 }
 0x32e   :  { %1174 = vmatpush3.bf16.msra.mxu1 %v1173_v32 }
 0x32f   :  { %1175 = vmatprep.subr.bf16.mxu1 %v1362_v0 }
 0x332   :  { %1177 = vmatpush3.bf16.msra.mxu1 %v1176_v40 }
 0x3e8   :  { %v501_v34 = vpop.f32.mrb[2].mxu1 }
 0x3e9   :  { %v502_v35 = vadd.f32 %v719_v33, %v501_v34  ;;  %v963_v36 = vpop.f32.mrb[3].mxu1 }
 0x3eb   :  { %v505_v37 = vmax.f32 %v502_v35, 0.0 }
 0x3ed   :  { %997 = vmatmul.mubr.f32.vlgmr.msra.gmra.mrb[4].mxu0 %v505_v37 }
 0x4c0   :  { %v595_v42 = vpop.f32.mrb[4].mxu0 }
 0x4c1   :  { %v596_v43 = vadd.f32 %v720_v41, %v595_v42  ;;  %v998_v0 = vpop.f32.mrb[5].mxu0 }
 0x4c3   :  { %v599_v44 = vmax.f32 %v596_v43, 0.0 }
 0x4c5   :  { %1032 = vmatmul.mubr.f32.vlgmr.msra.gmra.mrb[4].mxu1 %v599_v44 }
 0x598   :  { %v689_v46 = vpop.f32.mrb[4].mxu1 }
 0x599   :  { %v690_v47 = vadd.f32 %v721_v45, %v689_v46  ;;  %v1033_v48 = vpop.f32.mrb[5].mxu1 }
 0x59b   :  { %693 = vst [vmem:[#allocation13] sm:$0xff] %v690_v47 }
 0x59c   :  { %1333 = shalt.err (!%p1330_p10)
}
 0x59d   :  { %s1334_s1 = scalar_lea.hbm %s1662_s14, 128 }
 0x59e   :  { %p1335_p11 = scmp.ne.s32.totalorder %s1662_s14, %s1334_s1  ;;  %p1338_p12 = scmp.lt.u32.totalorder %s1334_s1, %s1662_s14 }
 0x5a0   :  { %p1340_p13 = pnand %p1338_p12, %p1335_p11 }
 0x5a2   :  { %1343 = shalt.err (!%p1340_p13)
}
 0x5a3   :  { %705 = dma.vmem_to_hbm [thread:$0]  %s703_s15, 128, %s1662_s14, [#allocation4]  }
 0x5a4   :  { %1352 = dma.done.wait [#allocation4], 128  }
 0x5a5   :  { %1353 = vsyncadd [#allocation4], 4294967168 }
 0x5a6   :  { %711 = vsyncpa [#allocation3], 1 }
 0x5a7   :  { %712 = vsyncpa [#allocation6], 1 }
 0x5a8   :  { %713 = vsyncpa [#allocation9], 1 }
 0x5a9   :  { %714 = vsyncpa [#allocation12], 1 }
 0x5aa   :  { %715 = vsyncpa [#allocation4], 1 }

</bundles_post_ra>
